<compile_context>
chip_gen: v7x
topology: tpu7x:2x2x1
jax: 0.10.0
libtpu: 0.0.40
codegen_flags: <defaults>
</compile_context>

<pallas_src>
import jax
import jax.numpy as jnp
from jax import lax
from jax.experimental import pallas as pl
from jax.experimental.pallas import tpu as pltpu


_LANE = 128
_SUBLANE = 8
_MXU_ALIGN = 256                      # v6e/v7x MXU = 2x 256x256; also a 128 multiple (v5e)
_MAX_VMEM_BUDGET = 48 * 1024 * 1024   # safe per-TC cap across v5e/v6e/v7x


def _round_up(x, m):
    return ((x + m - 1) // m) * m


def _vmem_budget_bytes():
    """Generation-aware scoped-VMEM budget (per TensorCore)."""
    try:
        cap = pltpu.get_tpu_info().vmem_capacity_bytes
    except Exception:
        cap = 64 * 1024 * 1024  # assume the smallest (v7x per-TC) if query fails
    # 75% of reported capacity, capped at 48 MiB: ~48 MiB on v7x (64 MiB/TC) and
    # 48 MiB on v5e/v6e (128 MiB physical) -- leaves headroom for Mosaic internals.
    return min(int(0.75 * cap), _MAX_VMEM_BUDGET)


def _step_vmem_bytes(tile_n, v_tile, d_pad, w_itemsize, w_nbuf):
    """Rough per-pipelined-step VMEM footprint used to pick tile sizes."""
    w_buf = w_nbuf * v_tile * d_pad * w_itemsize   # codebook tile(s); 1 buf if resident
    out_buf = 2 * tile_n * d_pad * w_itemsize      # output tile (double-buffered)
    acc = tile_n * d_pad * 4                       # f32 accumulator scratch
    ids_buf = 2 * tile_n * _LANE * 4               # (TN,1) int32 block pads to 128 lanes
    onehot = tile_n * v_tile * 4                   # one-hot intermediate (conservative f32)
    return w_buf + out_buf + acc + ids_buf + onehot


def _embedding_onehot_kernel(ids_ref, w_ref, out_ref, acc_ref):
    """One (token-tile, vocab-tile) grid step: gather = one-hot @ codebook (MXU).

    ids_ref : (TN, 1)   int32     token ids for this token tile
    w_ref   : (TV, Dp)  f32/bf16  one vocab tile of the (padded) codebook
    out_ref : (TN, Dp)  f32/bf16  gathered embeddings for this token tile
    acc_ref : (TN, Dp)  f32       accumulator scratch across vocab tiles
    """
    v_idx = pl.program_id(1)

    @pl.when(v_idx == 0)
    def _():
        acc_ref[...] = jnp.zeros_like(acc_ref)

    ids = ids_ref[...]                                            # (TN, 1)
    tn = ids.shape[0]
    tv = w_ref.shape[0]
    vocab_base = v_idx * tv
    vocab_iota = vocab_base + lax.broadcasted_iota(jnp.int32, (tn, tv), 1)
    # One-hot in the codebook dtype: 0/1 are exact in bf16, so a bf16 codebook runs
    # at native bf16 MXU rate; an f32 codebook keeps f32 inputs (no bf16 cast on v5e).
    onehot = (ids == vocab_iota).astype(w_ref.dtype)              # (TN, TV)
    acc_ref[...] += jnp.dot(onehot, w_ref[...],
                            preferred_element_type=jnp.float32)

    @pl.when(v_idx == pl.num_programs(1) - 1)
    def _():
        out_ref[...] = acc_ref[...].astype(out_ref.dtype)


def embedding_ema_forward(embed_id, weight, *, tile_n=512, vocab_tile=None):
    """Equivalent of EmbeddingEMA.forward(embed_id) = F.embedding(embed_id, weight)."""
    orig_shape = embed_id.shape
    num_vocab, embed_dim = weight.shape
    w_itemsize = jnp.dtype(weight.dtype).itemsize
    budget = _vmem_budget_bytes()

    # --- pad embed_dim to a lane multiple: lane-dense (unmasked) output stores and
    #     full MXU N-dim utilization; sliced off after the call.
    d_pad = _round_up(embed_dim, _LANE)
    if d_pad != embed_dim:
        weight = jnp.pad(weight, ((0, 0), (0, d_pad - embed_dim)))

    # --- vocab tiling: keep the codebook resident (single-buffered) when it fits
    #     comfortably; otherwise stream 256-aligned vocab tiles and accumulate.
    v_pad_full = _round_up(num_vocab, _MXU_ALIGN)
    resident_bytes = v_pad_full * d_pad * w_itemsize
    if vocab_tile is not None:
        v_tile = _round_up(vocab_tile, _LANE)
        v_pad = _round_up(num_vocab, v_tile)
    elif resident_bytes <= budget // 2:
        v_tile = v_pad_full
        v_pad = v_pad_full
    else:
        # Streaming tiles are double-buffered; keep the weight stream <= ~35% budget.
        v_tile = (budget * 35 // 100) // (2 * d_pad * w_itemsize)
        v_tile = max(_MXU_ALIGN, (v_tile // _MXU_ALIGN) * _MXU_ALIGN)
        v_pad = _round_up(num_vocab, v_tile)
    if v_pad != num_vocab:
        # Zero rows are never selected by in-range ids (and contribute exact zeros).
        weight = jnp.pad(weight, ((0, v_pad - num_vocab), (0, 0)))
    num_vocab_tiles = v_pad // v_tile
    w_nbuf = 1 if num_vocab_tiles == 1 else 2

    # --- token tiling: large tile (default 512) to amortize per-grid-step overhead,
    #     shrunk until the per-step VMEM estimate fits the budget.
    ids_flat = embed_id.reshape(-1).astype(jnp.int32)
    n = ids_flat.shape[0]
    tile = max(_SUBLANE, _round_up(min(tile_n, _round_up(n, _SUBLANE)), _SUBLANE))
    while tile > _SUBLANE and _step_vmem_bytes(
        tile, v_tile, d_pad, w_itemsize, w_nbuf
    ) > int(0.9 * budget):
        tile = max(_SUBLANE, _round_up(tile // 2, _SUBLANE))

    n_pad = _round_up(n, tile)
    if n_pad != n:
        ids_flat = jnp.pad(ids_flat, (0, n_pad - n))   # pad ids gather row 0, sliced off
    ids2d = ids_flat.reshape(n_pad, 1)

    grid = (n_pad // tile, num_vocab_tiles)

    if num_vocab_tiles == 1:
        # Constant index_map -> single-buffer the resident codebook (halves its VMEM).
        w_spec = pl.BlockSpec((v_tile, d_pad), lambda i, v: (0, 0),
                              pipeline_mode=pl.Buffered(1))
    else:
        w_spec = pl.BlockSpec((v_tile, d_pad), lambda i, v: (v, 0))

    out = pl.pallas_call(
        _embedding_onehot_kernel,
        out_shape=jax.ShapeDtypeStruct((n_pad, d_pad), weight.dtype),
        grid_spec=pltpu.PrefetchScalarGridSpec(
            num_scalar_prefetch=0,
            grid=grid,
            in_specs=[
                # ids tile: marches down the flattened token axis, constant across v.
                pl.BlockSpec((tile, 1), lambda i, v: (i, 0)),
                w_spec,
            ],
            # Output block constant across the vocab (reduction) axis.
            out_specs=pl.BlockSpec((tile, d_pad), lambda i, v: (i, 0)),
            scratch_shapes=[pltpu.VMEM((tile, d_pad), jnp.float32)],
        ),
        compiler_params=pltpu.CompilerParams(
            # Token tiles are independent (megacore-shardable); vocab is a reduction.
            dimension_semantics=("parallel", "arbitrary"),
            vmem_limit_bytes=budget,
        ),
    )(ids2d, weight)

    out = out[:n, :embed_dim]
    return out.reshape(*orig_shape, embed_dim)


def init_embedding_ema_params(num_vocab, embed_dim, key):
    """Mirrors the `kmeans_init=False` branch of EmbeddingEMA.__init__:
    weight = l2norm(randn(V, D)); embed_avg = weight.copy(); cluster_size = zeros(V)."""
    w = jax.random.normal(key, (num_vocab, embed_dim), dtype=jnp.float32)
    norm = jnp.maximum(jnp.linalg.norm(w, axis=-1, keepdims=True), 1e-12)
    weight = w / norm
    cluster_size = jnp.zeros((num_vocab,), jnp.float32)
    embed_avg = weight.copy()
    return weight, cluster_size, embed_avg


if __name__ == "__main__":
    root = jax.random.PRNGKey(0)
    k_w, k_id, k_w2, k_id2, k_w3, k_id3 = jax.random.split(root, 6)

    # --- Case 1: V=128, D=128, f32 codebook (module default), ids (2, 8) ---
    num_vocab, embed_dim = 128, 128
    batch, seq = 2, 8
    weight, cluster_size, embed_avg = init_embedding_ema_params(num_vocab, embed_dim, k_w)
    embed_id = jax.random.randint(k_id, (batch, seq), 0, num_vocab, dtype=jnp.int32)

    out = jax.block_until_ready(embedding_ema_forward(embed_id, weight))
    ref = jnp.take(weight, embed_id, axis=0)
    assert out.shape == (batch, seq, embed_dim), out.shape
    assert out.dtype == weight.dtype
    assert jnp.allclose(out, ref, rtol=1e-5, atol=1e-6), "mismatch vs reference (f32)"

    # --- Case 2: bf16 codebook: lossless bf16 one-hot, native MXU rate ---
    weight_bf16 = weight.astype(jnp.bfloat16)
    out_bf16 = jax.block_until_ready(embedding_ema_forward(embed_id, weight_bf16))
    ref_bf16 = jnp.take(weight_bf16, embed_id, axis=0)
    assert out_bf16.dtype == jnp.bfloat16
    assert jnp.allclose(out_bf16.astype(jnp.float32), ref_bf16.astype(jnp.float32),
                        atol=1e-6), "mismatch vs reference (bf16)"

    # --- Case 3: unaligned V=200, D=96 (exercises vocab + embed_dim padding) ---
    w3, _, _ = init_embedding_ema_params(200, 96, k_w2)
    ids3 = jax.random.randint(k_id2, (3, 7), 0, 200, dtype=jnp.int32)
    out3 = jax.block_until_ready(embedding_ema_forward(ids3, w3))
    ref3 = jnp.take(w3, ids3, axis=0)
    assert out3.shape == (3, 7, 96), out3.shape
    assert jnp.allclose(out3, ref3, rtol=1e-5, atol=1e-6), "mismatch (padded dims)"

    # --- Case 4: forced vocab tiling (exercises streamed-reduction accumulator path) ---
    w4, _, _ = init_embedding_ema_params(512, 128, k_w3)
    ids4 = jax.random.randint(k_id3, (2, 8), 0, 512, dtype=jnp.int32)
    out4 = jax.block_until_ready(embedding_ema_forward(ids4, w4, vocab_tile=256))
    ref4 = jnp.take(w4, ids4, axis=0)
    assert jnp.allclose(out4, ref4, rtol=1e-5, atol=1e-6), "mismatch (vocab-tiled)"

    print("KERNEL_OK")
</pallas_src>

<mosaic_0001>
module attributes {stable_mosaic.version = 11 : i64} {
  func.func @_embedding_onehot_kernel(%arg0: i32, %arg1: i32, %arg2: memref<16x1xi32, #tpu.memory_space<vmem>>, %arg3: memref<256x128xf32, #tpu.memory_space<vmem>>, %arg4: memref<16x128xf32, #tpu.memory_space<vmem>>, %arg5: memref<16x128xf32, #tpu.memory_space<vmem>>) attributes {dimension_semantics = [#tpu.dimension_semantics<parallel>, #tpu.dimension_semantics<arbitrary>], iteration_bounds = array<i64: 1, 1>, scalar_prefetch = 0 : i64, scratch_operands = 1 : i64, tpu.core_type = #tpu.core_type<tc>, window_params = [{transform_indices = @transform_0, window_bounds = array<i64: 16, 1>}, {pipeline_mode = #tpu.pipeline_mode<synchronous>, transform_indices = @transform_1, window_bounds = array<i64: 256, 128>}, {transform_indices = @transform_2, window_bounds = array<i64: 16, 128>}]} {
    %c0_i32 = arith.constant 0 : i32
    %0 = arith.cmpi eq, %arg1, %c0_i32 : i32
    %1 = arith.extui %0 : i1 to i32
    %c0_i32_0 = arith.constant 0 : i32
    %2 = arith.cmpi ne, %1, %c0_i32_0 : i32
    scf.if %2 {
      %cst_10 = arith.constant 0.000000e+00 : f32
      %20 = vector.broadcast %cst_10 : f32 to vector<16x128xf32>
      %c0_11 = arith.constant 0 : index
      %c0_12 = arith.constant 0 : index
      %21 = vector.load %arg5[%c0_11, %c0_12] : memref<16x128xf32, #tpu.memory_space<vmem>>, vector<16x128xf32>
      tpu.vector_store %arg5[%c0_11, %c0_12], %20 {strides = array<i32>} : memref<16x128xf32, #tpu.memory_space<vmem>>, vector<16x128xf32>,
    } else {
    }
    %c0 = arith.constant 0 : index
    %c0_1 = arith.constant 0 : index
    %3 = vector.load %arg2[%c0, %c0_1] : memref<16x1xi32, #tpu.memory_space<vmem>>, vector<16x1xi32>
    %c256_i32 = arith.constant 256 : i32
    %4 = arith.muli %arg1, %c256_i32 : i32
    %5 = tpu.iota {dimensions = array<i32: 1>} : vector<16x256xi32>
    %6 = vector.broadcast %4 : i32 to vector<16x256xi32>
    %7 = arith.addi %6, %5 : vector<16x256xi32>
    %8 = vector.broadcast %3 : vector<16x1xi32> to vector<16x256xi32>
    %9 = arith.cmpi eq, %8, %7 : vector<16x256xi32>
    %10 = arith.extui %9 : vector<16x256xi1> to vector<16x256xi32>
    %11 = arith.sitofp %10 : vector<16x256xi32> to vector<16x256xf32>
    %c0_2 = arith.constant 0 : index
    %c0_3 = arith.constant 0 : index
    %12 = vector.load %arg5[%c0_2, %c0_3] : memref<16x128xf32, #tpu.memory_space<vmem>>, vector<16x128xf32>
    %c0_4 = arith.constant 0 : index
    %c0_5 = arith.constant 0 : index
    %13 = vector.load %arg3[%c0_4, %c0_5] : memref<256x128xf32, #tpu.memory_space<vmem>>, vector<256x128xf32>
    %cst = arith.constant dense<0.000000e+00> : vector<16x128xf32>
    %14 = tpu.matmul %11, %13, %cst {dimension_numbers = #tpu.dot_dimension_numbers<[1], [0], [0], [1], [0, 0, 1, 1], [], []>} : vector<16x256xf32>, vector<256x128xf32>, vector<16x128xf32> -> vector<16x128xf32>
    %15 = arith.addf %12, %14 : vector<16x128xf32>
    %c0_6 = arith.constant 0 : index
    %c0_7 = arith.constant 0 : index
    %16 = vector.load %arg5[%c0_6, %c0_7] : memref<16x128xf32, #tpu.memory_space<vmem>>, vector<16x128xf32>
    tpu.vector_store %arg5[%c0_6, %c0_7], %15 {strides = array<i32>} : memref<16x128xf32, #tpu.memory_space<vmem>>, vector<16x128xf32>,
    %c0_i32_8 = arith.constant 0 : i32
    %17 = arith.cmpi eq, %arg1, %c0_i32_8 : i32
    %18 = arith.extui %17 : i1 to i32
    %c0_i32_9 = arith.constant 0 : i32
    %19 = arith.cmpi ne, %18, %c0_i32_9 : i32
    scf.if %19 {
      %c0_10 = arith.constant 0 : index
      %c0_11 = arith.constant 0 : index
      %20 = vector.load %arg5[%c0_10, %c0_11] : memref<16x128xf32, #tpu.memory_space<vmem>>, vector<16x128xf32>
      %c0_12 = arith.constant 0 : index
      %c0_13 = arith.constant 0 : index
      %21 = vector.load %arg4[%c0_12, %c0_13] : memref<16x128xf32, #tpu.memory_space<vmem>>, vector<16x128xf32>
      tpu.vector_store %arg4[%c0_12, %c0_13], %20 {strides = array<i32>} : memref<16x128xf32, #tpu.memory_space<vmem>>, vector<16x128xf32>,
    } else {
    }
    return
  }
  func.func @transform_0(%arg0: i32, %arg1: i32) -> (i32, i32) {
    %c0_i32 = arith.constant 0 : i32
    %c0_i32_0 = arith.constant 0 : i32
    return %arg0, %c0_i32 : i32, i32
  }
  func.func @transform_1(%arg0: i32, %arg1: i32) -> (i32, i32) {
    %c0_i32 = arith.constant 0 : i32
    %c0_i32_0 = arith.constant 0 : i32
    %c0_i32_1 = arith.constant 0 : i32
    return %c0_i32, %c0_i32_0 : i32, i32
  }
  func.func @transform_2(%arg0: i32, %arg1: i32) -> (i32, i32) {
    %c0_i32 = arith.constant 0 : i32
    %c0_i32_0 = arith.constant 0 : i32
    return %arg0, %c0_i32 : i32, i32
  }
}

</mosaic_0001>

<bundles_post_ra>
// kernel: tpu_custom_call.1
= control target key start
LH: loop header
LB: loop body
LE: loop exit
PB: predicated region body
PF: predicated region fallthrough
CT: control target
= control target key end

     0   :  { %7 = vsyncpa [#allocation4], 0  ;;  %s402_s0 = inlined_call_operand.vmem [shape: s32[16,1], index: 0, kind: input, shape index: {}]   ;;  %s403_s1 = inlined_call_operand.hbm [shape: f32[256,128], index: 1, kind: input, shape index: {}]   ;;  %s404_s2 = inlined_call_operand.hbm [shape: f32[16,128], index: 2, kind: output, shape index: {}]  }
   0x1   :  { %8 = vsyncpa [#allocation5], 0  ;;  %s345_s9 = smov [#allocation3]   ;;  %s297_s13 = scalar_lea.hbm %s403_s1, 4096 }
   0x2   :  { %s16_s10 = sshll.u32 %s345_s9, 4  ;;  %p298_p0 = scmp.ne.s32.totalorder %s403_s1, %s297_s13  ;;  %s17_s10 = int_to_ptr.vmem [resolvable:$true] %s16_s10 }
   0x3   :  { %p301_p1 = scmp.lt.u32.totalorder %s297_s13, %s403_s1 }
   0x5   :  { %p303_p2 = pnand %p301_p1, %p298_p0 }
   0x7   :  { %306 = shalt.err (!%p303_p2)
}
   0x8   :  { %s307_s18 = scalar_lea.vmem %s17_s10, 4096  ;;  %p312_p4 = scmp.lt.s32.totalorder %s17_s10, %s17_s10 }
   0x9   :  { %p308_p3 = scmp.ne.s32.totalorder %s17_s10, %s307_s18  ;;  %p313_p5 = scmp.lt.s32.totalorder %s307_s18, %s307_s18 }
   0xb   :  { %p314_p6 = por %p313_p5, %p312_p4 }
   0xd   :  { %p315_p7 = pnand %p314_p6, %p308_p3 }
   0xf   :  { %318 = shalt.err (!%p315_p7)
}
  0x10   :  { %s346_s19 = smov 128   ;;  %s347_s20 = smov 8  }
  0x11   :  { %22 = dma.hbm_to_vmem [thread:$0]  %s403_s1, 4096, %s17_s10, [#allocation4], %s346_s19, %s346_s19, %s347_s20  }
  0x12   :  { %341 = dma.done.wait [#allocation4], 4096  }
  0x13   :  { %342 = vsyncadd [#allocation4], 4294963200  ;;  %v348_v0 = vmov 0   ;;  %v32_v1 = vld [vmem:[%s402_s0] sm:$0xff]  ;;  %v33_v2 = vld [vmem:[%s402_s0 + $0x8] sm:$0xff]  ;;  %v35_v51 = vlaneseq  ;;  %v349_v55 = vmov 1.0  }
  0x14   :  { %296 = vset.pattern.permute.xlu0 %v348_v0  ;;  %v77_v3 = vld [vmem:[#allocation3 + $0x80] sm:$0xff]  ;;  %v78_v4 = vld [vmem:[#allocation3 + $0x88] sm:$0xff]  ;;  %v79_v9 = vld [vmem:[#allocation3 + $0x90] sm:$0xff]  ;;  %s350_s0 = smov [#allocation6]  }
  0x15   :  { %42 = vperm.xlu0 %296, %v32_v1   ;;  %v61_v5 = vld [vmem:[#allocation3] sm:$0xff]  ;;  %v62_v6 = vld [vmem:[#allocation3 + $0x8] sm:$0xff]  ;;  %v242_v7 = vpack.c.bf16 %v78_v4, %v77_v3  ;;  %v80_v10 = vld [vmem:[#allocation3 + $0x98] sm:$0xff]  ;;  %v36_v52 = vand.u32 127, %v35_v51  ;;  %s184_s1 = sshll.u32 %s350_s0, 4  ;;  %s185_s1 = int_to_ptr.vmem [resolvable:$true] %s184_s1 }
  0x16   :  { %v244_v8 = vpack.c.bf16 %v62_v6, %v61_v5  ;;  %v63_v11 = vld [vmem:[#allocation3 + $0x10] sm:$0xff]  ;;  %v246_v12 = vpack.c.bf16 %v80_v10, %v79_v9  ;;  %v64_v13 = vld [vmem:[#allocation3 + $0x18] sm:$0xff]  ;;  %v81_v14 = vld [vmem:[#allocation3 + $0xa0] sm:$0xff]  ;;  %s319_s27 = scalar_lea.vmem %s185_s1, 256  ;;  %p324_p9 = scmp.lt.s32.totalorder %s185_s1, %s185_s1 }
  0x17   :  { %v82_v15 = vld [vmem:[#allocation3 + $0xa8] sm:$0xff]  ;;  %243 = vmatprep.subr.bf16.mxu0 %v242_v7  ;;  %274 = vmatprep.subr.bf16.mxu1 %v242_v7  ;;  %v248_v16 = vpack.c.bf16 %v64_v13, %v63_v11  ;;  %v65_v18 = vld [vmem:[#allocation3 + $0x20] sm:$0xff]  ;;  %v83_v20 = vld [vmem:[#allocation3 + $0xb0] sm:$0xff]  ;;  %v37_v53 = vadd.s32 128, %v36_v52  ;;  %p320_p8 = scmp.ne.s32.totalorder %s185_s1, %s319_s27  ;;  %p325_p10 = scmp.lt.s32.totalorder %s319_s27, %s319_s27 }
  0x18   :  { %245 = vmatpush3.bf16.msra.mxu0 %v244_v8  ;;  %282 = vmatpush3.bf16.msra.mxu1 %v244_v8  ;;  %v250_v17 = vpack.c.bf16 %v82_v15, %v81_v14  ;;  %v66_v19 = vld [vmem:[#allocation3 + $0x28] sm:$0xff]  ;;  %v84_v21 = vld [vmem:[#allocation3 + $0xb8] sm:$0xff]  ;;  %v67_v24 = vld [vmem:[#allocation3 + $0x30] sm:$0xff] }
  0x19   :  { %45 = vperm.xlu0 %296, %v33_v2   ;;  %247 = vmatprep.subr.bf16.mxu0 %v246_v12  ;;  %v252_v22 = vpack.c.bf16 %v66_v19, %v65_v18  ;;  %v254_v23 = vpack.c.bf16 %v84_v21, %v83_v20  ;;  %v68_v25 = vld [vmem:[#allocation3 + $0x38] sm:$0xff]  ;;  %v85_v26 = vld [vmem:[#allocation3 + $0xc0] sm:$0xff]  ;;  %v86_v27 = vld [vmem:[#allocation3 + $0xc8] sm:$0xff]  ;;  %p326_p11 = por %p325_p10, %p324_p9 }
  0x1a   :  { %275 = vmatprep.subr.bf16.mxu1 %v246_v12  ;;  %v256_v28 = vpack.c.bf16 %v68_v25, %v67_v24  ;;  %v258_v29 = vpack.c.bf16 %v86_v27, %v85_v26  ;;  %v69_v30 = vld [vmem:[#allocation3 + $0x40] sm:$0xff]  ;;  %v70_v31 = vld [vmem:[#allocation3 + $0x48] sm:$0xff]  ;;  %v87_v32 = vld [vmem:[#allocation3 + $0xd0] sm:$0xff] }
  0x1b   :  { %v88_v33 = vld [vmem:[#allocation3 + $0xd8] sm:$0xff]  ;;  %v260_v34 = vpack.c.bf16 %v70_v31, %v69_v30  ;;  %v71_v36 = vld [vmem:[#allocation3 + $0x50] sm:$0xff]  ;;  %v89_v38 = vld [vmem:[#allocation3 + $0xe0] sm:$0xff]  ;;  %p327_p12 = pnand %p326_p11, %p320_p8 }
  0x1c   :  { %249 = vmatpush3.bf16.msra.mxu0 %v248_v16  ;;  %283 = vmatpush3.bf16.msra.mxu1 %v248_v16  ;;  %v262_v35 = vpack.c.bf16 %v88_v33, %v87_v32  ;;  %v72_v37 = vld [vmem:[#allocation3 + $0x58] sm:$0xff]  ;;  %v90_v39 = vld [vmem:[#allocation3 + $0xe8] sm:$0xff]  ;;  %v73_v42 = vld [vmem:[#allocation3 + $0x60] sm:$0xff] }
  0x1d   :  { %251 = vmatprep.subr.bf16.mxu0 %v250_v17  ;;  %276 = vmatprep.subr.bf16.mxu1 %v250_v17  ;;  %v264_v40 = vpack.c.bf16 %v72_v37, %v71_v36  ;;  %v266_v41 = vpack.c.bf16 %v90_v39, %v89_v38  ;;  %v74_v43 = vld [vmem:[#allocation3 + $0x68] sm:$0xff]  ;;  %v91_v44 = vld [vmem:[#allocation3 + $0xf0] sm:$0xff]  ;;  %v92_v45 = vld [vmem:[#allocation3 + $0xf8] sm:$0xff] }
  0x1e   :  { %v268_v46 = vpack.c.bf16 %v74_v43, %v73_v42  ;;  %v270_v47 = vpack.c.bf16 %v92_v45, %v91_v44  ;;  %v75_v48 = vld [vmem:[#allocation3 + $0x70] sm:$0xff]  ;;  %v76_v49 = vld [vmem:[#allocation3 + $0x78] sm:$0xff] }
  0x1f   :  { %v272_v50 = vpack.c.bf16 %v76_v49, %v75_v48 }
  0x20   :  { %253 = vmatpush3.bf16.msra.mxu0 %v252_v22  ;;  %284 = vmatpush3.bf16.msra.mxu1 %v252_v22 }
  0x21   :  { %255 = vmatprep.subr.bf16.mxu0 %v254_v23  ;;  %277 = vmatprep.subr.bf16.mxu1 %v254_v23 }
  0x24   :  { %257 = vmatpush3.bf16.msra.mxu0 %v256_v28  ;;  %285 = vmatpush3.bf16.msra.mxu1 %v256_v28 }
  0x25   :  { %259 = vmatprep.subr.bf16.mxu0 %v258_v29  ;;  %278 = vmatprep.subr.bf16.mxu1 %v258_v29 }
  0x28   :  { %261 = vmatpush3.bf16.msra.mxu0 %v260_v34  ;;  %286 = vmatpush3.bf16.msra.mxu1 %v260_v34 }
  0x29   :  { %263 = vmatprep.subr.bf16.mxu0 %v262_v35  ;;  %279 = vmatprep.subr.bf16.mxu1 %v262_v35 }
  0x2c   :  { %265 = vmatpush3.bf16.msra.mxu0 %v264_v40  ;;  %287 = vmatpush3.bf16.msra.mxu1 %v264_v40 }
  0x2d   :  { %267 = vmatprep.subr.bf16.mxu0 %v266_v41  ;;  %280 = vmatprep.subr.bf16.mxu1 %v266_v41 }
  0x30   :  { %269 = vmatpush3.bf16.msra.mxu0 %v268_v46  ;;  %288 = vmatpush3.bf16.msra.mxu1 %v268_v46 }
  0x31   :  { %271 = vmatprep.subr.bf16.mxu0 %v270_v47  ;;  %281 = vmatprep.subr.bf16.mxu1 %v270_v47 }
  0x34   :  { %273 = vmatpush3.bf16.msra.mxu0 %v272_v50  ;;  %289 = vmatpush3.bf16.msra.mxu1 %v272_v50 }
  0x94   :  { %v43_v54 = vpop.permute.xlu0 %42 }
  0x95   :  { %vm47_vm0 = vcmp.eq.s32.totalorder %v43_v54, %v36_v52  ;;  %vm48_vm1 = vcmp.eq.s32.totalorder %v43_v54, %v37_v53 }
  0x96   :  { %200 = vmatprep.mubr.msk.f32.mxu0 %vm48_vm1, %v349_v55 }
  0x97   :  { %201 = vmatmul.mubr.msk.f32.vlgmr.msra.gmra.mrb[0].mxu0 %vm47_vm0, %v349_v55 }
  0x98   :  { %v46_v56 = vpop.permute.xlu0 %45 }
  0x99   :  { %vm49_vm2 = vcmp.eq.s32.totalorder %v46_v56, %v36_v52  ;;  %vm50_vm3 = vcmp.eq.s32.totalorder %v46_v56, %v37_v53 }
  0x9a   :  { %202 = vmatprep.mubr.msk.f32.mxu1 %vm50_vm3, %v349_v55 }
  0x9b   :  { %203 = vmatmul.mubr.msk.f32.vlgmr.msra.gmra.mrb[0].mxu1 %vm49_vm2, %v349_v55 }
 0x16a   :  { %v236_v57 = vpop.f32.mrb[0].mxu0 }
 0x16b   :  { %v237_v58 = vpop.f32.mrb[1].mxu0 }
 0x16c   :  { %v238_v59 = vadd.f32 %v237_v58, %v236_v57 }
 0x16e   :  { %177 = vst [vmem:[#allocation6] sm:$0xff] %v238_v59  ;;  %v239_v60 = vpop.f32.mrb[0].mxu1 }
 0x16f   :  { %v240_v61 = vpop.f32.mrb[1].mxu1 }
 0x170   :  { %v241_v62 = vadd.f32 %v240_v61, %v239_v60 }
 0x172   :  { %178 = vst [vmem:[#allocation6 + $0x8] sm:$0xff] %v241_v62 }
 0x173   :  { %330 = shalt.err (!%p327_p12)
}
 0x174   :  { %s331_s30 = scalar_lea.hbm %s404_s2, 256 }
 0x175   :  { %p332_p13 = scmp.ne.s32.totalorder %s404_s2, %s331_s30  ;;  %p335_p0 = scmp.lt.u32.totalorder %s331_s30, %s404_s2 }
 0x177   :  { %p337_p1 = pnand %p335_p0, %p332_p13 }
 0x179   :  { %340 = shalt.err (!%p337_p1)
}
 0x17a   :  { %190 = dma.vmem_to_hbm [thread:$0]  %s185_s1, 256, %s404_s2, [#allocation5], %s346_s19, %s346_s19, %s347_s20  }
 0x17b   :  { %343 = dma.done.wait [#allocation5], 256  }
 0x17c   :  { %344 = vsyncadd [#allocation5], 4294967040 }
 0x17d   :  { %194 = vsyncpa [#allocation4], 1 }
 0x17e   :  { %195 = vsyncpa [#allocation5], 1 }

</bundles_post_ra>
